<compile_context>
chip_gen: v7x
topology: tpu7x:2x2x1
jax: 0.10.0
libtpu: 0.0.40
codegen_flags: <defaults>
</compile_context>

<pallas_src>
import math
import functools

import jax
import jax.numpy as jnp
from jax.experimental import pallas as pl
from jax.experimental.pallas import tpu as pltpu

VMEM_LIMIT = 32 * 1024 * 1024  # fits scoped VMEM on v5e/v6e/v7x


def _pick_tile_m(M):
    """Largest M-tile that divides M (multiple of 8) — full array for small M."""
    if M <= 512:
        return M
    for t in (512, 256, 128, 64, 32, 16, 8):
        if M % t == 0:
            return t
    return M


# ----------------------------- Pallas kernels -----------------------------

def _ln_linear_kernel(x_ref, g_ref, b_ref, w_ref, bias_ref, o_ref):
    # LayerNorm (f32 stats) fused with a bf16 MXU matmul + bias.
    x = x_ref[...].astype(jnp.float32)
    mu = jnp.mean(x, axis=-1, keepdims=True)
    var = jnp.mean(jnp.square(x - mu), axis=-1, keepdims=True)
    xn = (x - mu) * jax.lax.rsqrt(var + 1e-5)
    xn = (xn * g_ref[...] + b_ref[...]).astype(jnp.bfloat16)
    o = jnp.dot(xn, w_ref[...], preferred_element_type=jnp.float32)
    o_ref[...] = (o + bias_ref[...]).astype(o_ref.dtype)


def _ln_ffn_kernel(x_ref, g_ref, b_ref, w1_ref, b1_ref, w2_ref, b2_ref, o_ref):
    # residual + W2 @ relu(W1 @ LN(x)) fully fused; hidden activation never leaves VMEM.
    x = x_ref[...].astype(jnp.float32)
    mu = jnp.mean(x, axis=-1, keepdims=True)
    var = jnp.mean(jnp.square(x - mu), axis=-1, keepdims=True)
    xn = (x - mu) * jax.lax.rsqrt(var + 1e-5)
    xn = (xn * g_ref[...] + b_ref[...]).astype(jnp.bfloat16)
    h = jnp.dot(xn, w1_ref[...], preferred_element_type=jnp.float32) + b1_ref[...]
    h = jnp.maximum(h, 0.0).astype(jnp.bfloat16)
    y = jnp.dot(h, w2_ref[...], preferred_element_type=jnp.float32) + b2_ref[...]
    o_ref[...] = (x + y).astype(o_ref.dtype)


def _mha_block_kernel(len_ref, q_ref, kv_ref, wo_ref, bo_ref, res_ref, o_ref,
                      *, n_head, h_size, causal, k_off, v_off, scale):
    # One batch element per grid step; all heads + softmax + output projection + residual fused.
    b = pl.program_id(0)
    klen = len_ref[b]                         # scalar-prefetched sequence length (SMEM)
    Tq = q_ref.shape[1]
    Tk = kv_ref.shape[1]
    C = o_ref.shape[2]
    hdim = n_head * h_size

    q = q_ref[0]                              # (Tq, qw)  f32
    kv = kv_ref[0]                            # (Tk, kvw) f32
    wo = wo_ref[...]                          # (hdim, C) bf16
    qh_all = q[:, :hdim].astype(jnp.bfloat16)
    kh_all = kv[:, k_off:k_off + hdim].astype(jnp.bfloat16)
    vh_all = kv[:, v_off:v_off + hdim].astype(jnp.bfloat16)

    # masks built in-kernel (no HBM bias array)
    kpos = jax.lax.broadcasted_iota(jnp.int32, (Tq, Tk), 1)
    keep = kpos < klen
    if causal:
        qpos = jax.lax.broadcasted_iota(jnp.int32, (Tq, Tk), 0)
        keep = jnp.logical_and(keep, kpos <= qpos)

    acc = jnp.zeros((Tq, C), jnp.float32)
    for h in range(n_head):                   # unrolled; no per-head grid overhead
        sl = slice(h * h_size, (h + 1) * h_size)
        qh, kh, vh = qh_all[:, sl], kh_all[:, sl], vh_all[:, sl]
        # contract last axis of both operands: no materialized transpose.
        s = jax.lax.dot_general(qh, kh, (((1,), (1,)), ((), ())),
                                preferred_element_type=jnp.float32) * scale
        s = jnp.where(keep, s, jnp.float32(-1e9))
        m = jnp.max(s, axis=-1, keepdims=True)
        p = jnp.exp(s - m)
        p = p * pl.reciprocal(jnp.sum(p, axis=-1, keepdims=True), approx=True)
        oh = jnp.dot(p.astype(jnp.bfloat16), vh, preferred_element_type=jnp.float32)
        # fold the per-head slice of the output projection into the accumulator
        acc = acc + jnp.dot(oh.astype(jnp.bfloat16), wo[sl, :],
                            preferred_element_type=jnp.float32)

    out = acc + bo_ref[...]
    o_ref[0] = (res_ref[0] + out).astype(o_ref.dtype)   # residual fused (dropout=identity)


# ----------------------------- kernel wrappers -----------------------------

def ln_linear(x2d, gamma, beta, w, bias):
    M, C = x2d.shape
    N = w.shape[1]
    tm = _pick_tile_m(M)
    return pl.pallas_call(
        _ln_linear_kernel,
        grid=(M // tm,),
        in_specs=[
            pl.BlockSpec((tm, C), lambda i: (i, 0)),
            pl.BlockSpec((1, C), lambda i: (0, 0)),
            pl.BlockSpec((1, C), lambda i: (0, 0)),
            pl.BlockSpec((C, N), lambda i: (0, 0)),
            pl.BlockSpec((1, N), lambda i: (0, 0)),
        ],
        out_specs=pl.BlockSpec((tm, N), lambda i: (i, 0)),
        out_shape=jax.ShapeDtypeStruct((M, N), jnp.float32),
        compiler_params=pltpu.CompilerParams(
            dimension_semantics=("parallel",),
            vmem_limit_bytes=VMEM_LIMIT),
    )(x2d, gamma.reshape(1, C), beta.reshape(1, C), w, bias.reshape(1, N))


def ln_ffn(x2d, gamma, beta, w1, b1, w2, b2):
    M, C = x2d.shape
    H = w1.shape[1]
    tm = _pick_tile_m(M)
    return pl.pallas_call(
        _ln_ffn_kernel,
        grid=(M // tm,),
        in_specs=[
            pl.BlockSpec((tm, C), lambda i: (i, 0)),
            pl.BlockSpec((1, C), lambda i: (0, 0)),
            pl.BlockSpec((1, C), lambda i: (0, 0)),
            pl.BlockSpec((C, H), lambda i: (0, 0)),
            pl.BlockSpec((1, H), lambda i: (0, 0)),
            pl.BlockSpec((H, C), lambda i: (0, 0)),
            pl.BlockSpec((1, C), lambda i: (0, 0)),
        ],
        out_specs=pl.BlockSpec((tm, C), lambda i: (i, 0)),
        out_shape=jax.ShapeDtypeStruct((M, C), jnp.float32),
        compiler_params=pltpu.CompilerParams(
            dimension_semantics=("parallel",),
            vmem_limit_bytes=VMEM_LIMIT),
    )(x2d, gamma.reshape(1, C), beta.reshape(1, C), w1, b1.reshape(1, H),
      w2, b2.reshape(1, C))


def mha_block(q, kv, lens, wo, bo, residual, *, n_head, h_size, causal, k_off, v_off):
    # q:(B,Tq,qw) kv:(B,Tk,kvw) lens:(B,) wo:(hdim,C) bo:(C,) residual:(B,Tq,C)
    B, Tq, qw = q.shape
    _, Tk, kvw = kv.shape
    C = residual.shape[-1]
    hdim = n_head * h_size
    kernel = functools.partial(
        _mha_block_kernel, n_head=n_head, h_size=h_size, causal=causal,
        k_off=k_off, v_off=v_off, scale=1.0 / math.sqrt(h_size))
    return pl.pallas_call(
        kernel,
        grid_spec=pltpu.PrefetchScalarGridSpec(
            num_scalar_prefetch=1,
            grid=(B,),
            in_specs=[
                pl.BlockSpec((1, Tq, qw), lambda b, lens: (b, 0, 0)),
                pl.BlockSpec((1, Tk, kvw), lambda b, lens: (b, 0, 0)),
                pl.BlockSpec((hdim, C), lambda b, lens: (0, 0)),
                pl.BlockSpec((1, C), lambda b, lens: (0, 0)),
                pl.BlockSpec((1, Tq, C), lambda b, lens: (b, 0, 0)),
            ],
            out_specs=pl.BlockSpec((1, Tq, C), lambda b, lens: (b, 0, 0)),
        ),
        out_shape=jax.ShapeDtypeStruct((B, Tq, C), jnp.float32),
        compiler_params=pltpu.CompilerParams(
            dimension_semantics=("parallel",),
            vmem_limit_bytes=VMEM_LIMIT),
    )(lens.astype(jnp.int32), q, kv, wo, bo.reshape(1, C), residual)


# ----------------------------- decoder forward -----------------------------

def decoder_forward(params, d_idx, d_seq_len, e_x, e_seq_len,
                    *, dv_size, n_emb, n_head, h_size, max_seq_len):
    B, dT = d_idx.shape
    eT = e_x.shape[1]
    assert dT <= max_seq_len
    hdim = n_head * h_size

    # token / positional embedding gather (glue, plain JAX)
    tok = jnp.take(params["tok_emb"], d_idx, axis=0) * math.sqrt(n_emb)
    pos = params["pos_emb"][:dT]
    x = (tok + pos[None, :, :]).astype(jnp.float32)          # (B, dT, C)

    e_x = e_x.astype(jnp.float32)
    d_len = d_seq_len.astype(jnp.int32)
    e_len = e_seq_len.astype(jnp.int32)

    for blk in params["blocks"]:
        # ---- self-attention: LN computed once, fused into the QKV projection ----
        p = blk["self"]
        qkv = ln_linear(x.reshape(B * dT, n_emb), p["ln_g"], p["ln_b"],
                        p["w_qkv"], p["b_qkv"]).reshape(B, dT, 3 * hdim)
        x = mha_block(qkv, qkv, d_len, p["wo"], p["bo"], x,
                      n_head=n_head, h_size=h_size, causal=True,
                      k_off=hdim, v_off=2 * hdim)
        # ---- cross-attention ----
        p = blk["cross"]
        q = ln_linear(x.reshape(B * dT, n_emb), p["ln_g"], p["ln_b"],
                      p["w_q"], p["b_q"]).reshape(B, dT, hdim)
        kv = ln_linear(e_x.reshape(B * eT, n_emb), p["ln_g"], p["ln_b"],
                       p["w_kv"], p["b_kv"]).reshape(B, eT, 2 * hdim)
        x = mha_block(q, kv, e_len, p["wo"], p["bo"], x,
                      n_head=n_head, h_size=h_size, causal=False,
                      k_off=0, v_off=hdim)
        # ---- feed-forward: LN + W1 + ReLU + W2 + residual fused ----
        p = blk["ff"]
        x = ln_ffn(x.reshape(B * dT, n_emb), p["ln_g"], p["ln_b"],
                   p["w1"], p["b1"], p["w2"], p["b2"]).reshape(B, dT, n_emb)

    # ---- final LN + vocab projection (padded to lane-dense 128 multiple) ----
    logits = ln_linear(x.reshape(B * dT, n_emb), params["ln_g"], params["ln_b"],
                       params["fc_w"], params["fc_b"])
    return logits[:, :dv_size].reshape(B, dT, dv_size)


# ----------------------------- params -----------------------------

def init_params(key, dv_size, n_emb, n_head, h_size, max_seq_len, n_block, exp_fac):
    hdim = n_head * h_size
    keys = iter(jax.random.split(key, 8 + 10 * n_block))

    def w(shape, scale=0.02):
        return jax.random.normal(next(keys), shape, jnp.float32) * scale

    def bf(a):
        return a.astype(jnp.bfloat16)   # bf16 weights for MXU (f32 accumulation in-kernel)

    vocab_pad = pl.cdiv(dv_size, 128) * 128
    fc_w = w((n_emb, dv_size))
    fc_w_pad = jnp.zeros((n_emb, vocab_pad), jnp.float32).at[:, :dv_size].set(fc_w)
    fc_b_pad = jnp.zeros((vocab_pad,), jnp.float32)

    params = {
        "tok_emb": w((dv_size, n_emb), 1.0),
        "pos_emb": w((max_seq_len, n_emb), 0.02),
        "ln_g": jnp.ones((n_emb,), jnp.float32),
        "ln_b": jnp.zeros((n_emb,), jnp.float32),
        "fc_w": bf(fc_w_pad),
        "fc_b": fc_b_pad,
        "blocks": [],
    }

    def attn_params(is_self):
        ps = {
            "ln_g": jnp.ones((n_emb,), jnp.float32),
            "ln_b": jnp.zeros((n_emb,), jnp.float32),
            "wo": bf(w((hdim, n_emb))),
            "bo": jnp.zeros((n_emb,), jnp.float32),
        }
        if is_self:
            ps["w_qkv"] = bf(jnp.concatenate([w((n_emb, hdim)) for _ in range(3)], axis=1))
            ps["b_qkv"] = jnp.zeros((3 * hdim,), jnp.float32)
        else:
            ps["w_q"] = bf(w((n_emb, hdim)))
            ps["b_q"] = jnp.zeros((hdim,), jnp.float32)
            ps["w_kv"] = bf(jnp.concatenate([w((n_emb, hdim)) for _ in range(2)], axis=1))
            ps["b_kv"] = jnp.zeros((2 * hdim,), jnp.float32)
        return ps

    for _ in range(n_block):
        params["blocks"].append({
            "self": attn_params(True),
            "cross": attn_params(False),
            "ff": {
                "ln_g": jnp.ones((n_emb,), jnp.float32),
                "ln_b": jnp.zeros((n_emb,), jnp.float32),
                "w1": bf(w((n_emb, exp_fac * n_emb))),
                "b1": jnp.zeros((exp_fac * n_emb,), jnp.float32),
                "w2": bf(w((exp_fac * n_emb, n_emb))),
                "b2": jnp.zeros((n_emb,), jnp.float32),
            },
        })
    return params


# ----------------------------- main -----------------------------

if __name__ == "__main__":
    dv_size, n_emb, n_head, h_size = 50, 32, 4, 8
    n_block, exp_fac, max_seq_len = 1, 4, 64
    B, dT, eT = 2, 8, 8

    key = jax.random.PRNGKey(0)
    kp, kd, ke = jax.random.split(key, 3)

    params = init_params(kp, dv_size, n_emb, n_head, h_size, max_seq_len, n_block, exp_fac)

    d_idx = jax.random.randint(kd, (B, dT), 0, dv_size, dtype=jnp.int32)
    d_seq_len = jnp.array([dT, 5], dtype=jnp.int32)
    e_x = jax.random.normal(ke, (B, eT, n_emb), jnp.float32)
    e_seq_len = jnp.array([eT, 6], dtype=jnp.int32)

    out = decoder_forward(
        params, d_idx, d_seq_len, e_x, e_seq_len,
        dv_size=dv_size, n_emb=n_emb, n_head=n_head, h_size=h_size,
        max_seq_len=max_seq_len,
    )
    out = jax.block_until_ready(out)
    assert out.shape == (B, dT, dv_size), out.shape
    assert bool(jnp.all(jnp.isfinite(out)))
    print("KERNEL_OK")
</pallas_src>

<mosaic_0001>
module attributes {stable_mosaic.version = 11 : i64} {
  func.func @_ln_linear_kernel(%arg0: i32, %arg1: memref<16x32xf32, #tpu.memory_space<vmem>>, %arg2: memref<1x32xf32, #tpu.memory_space<vmem>>, %arg3: memref<1x32xf32, #tpu.memory_space<vmem>>, %arg4: memref<32x96xbf16, #tpu.memory_space<vmem>>, %arg5: memref<1x96xf32, #tpu.memory_space<vmem>>, %arg6: memref<16x96xf32, #tpu.memory_space<vmem>>) attributes {dimension_semantics = [#tpu.dimension_semantics<parallel>], iteration_bounds = array<i64: 1>, scalar_prefetch = 0 : i64, scratch_operands = 0 : i64, tpu.core_type = #tpu.core_type<tc>, window_params = [{transform_indices = @transform_0, window_bounds = array<i64: 16, 32>}, {pipeline_mode = #tpu.pipeline_mode<synchronous>, transform_indices = @transform_1, window_bounds = array<i64: 1, 32>}, {pipeline_mode = #tpu.pipeline_mode<synchronous>, transform_indices = @transform_2, window_bounds = array<i64: 1, 32>}, {pipeline_mode = #tpu.pipeline_mode<synchronous>, transform_indices = @transform_3, window_bounds = array<i64: 32, 96>}, {pipeline_mode = #tpu.pipeline_mode<synchronous>, transform_indices = @transform_4, window_bounds = array<i64: 1, 96>}, {transform_indices = @transform_5, window_bounds = array<i64: 16, 96>}]} {
    %c0 = arith.constant 0 : index
    %c0_0 = arith.constant 0 : index
    %0 = vector.load %arg1[%c0, %c0_0] : memref<16x32xf32, #tpu.memory_space<vmem>>, vector<16x32xf32>
    %cst = arith.constant dense<0.000000e+00> : vector<16xf32>
    %1 = vector.multi_reduction <add>, %0, %cst [1] : vector<16x32xf32> to vector<16xf32>
    %2 = vector.shape_cast %1 : vector<16xf32> to vector<16x1xf32>
    %cst_1 = arith.constant 3.200000e+01 : f32
    %3 = vector.broadcast %cst_1 : f32 to vector<16x1xf32>
    %4 = arith.divf %2, %3 : vector<16x1xf32>
    %5 = vector.broadcast %4 : vector<16x1xf32> to vector<16x32xf32>
    %6 = arith.subf %0, %5 : vector<16x32xf32>
    %7 = arith.mulf %6, %6 : vector<16x32xf32>
    %cst_2 = arith.constant dense<0.000000e+00> : vector<16xf32>
    %8 = vector.multi_reduction <add>, %7, %cst_2 [1] : vector<16x32xf32> to vector<16xf32>
    %9 = vector.shape_cast %8 : vector<16xf32> to vector<16x1xf32>
    %cst_3 = arith.constant 3.200000e+01 : f32
    %10 = vector.broadcast %cst_3 : f32 to vector<16x1xf32>
    %11 = arith.divf %9, %10 : vector<16x1xf32>
    %12 = vector.broadcast %4 : vector<16x1xf32> to vector<16x32xf32>
    %13 = arith.subf %0, %12 : vector<16x32xf32>
    %cst_4 = arith.constant 9.99999974E-6 : f32
    %14 = vector.broadcast %cst_4 : f32 to vector<16x1xf32>
    %15 = arith.addf %11, %14 : vector<16x1xf32>
    %16 = math.rsqrt %15 : vector<16x1xf32>
    %17 = vector.broadcast %16 : vector<16x1xf32> to vector<16x32xf32>
    %18 = arith.mulf %13, %17 : vector<16x32xf32>
    %c0_5 = arith.constant 0 : index
    %c0_6 = arith.constant 0 : index
    %19 = vector.load %arg2[%c0_5, %c0_6] : memref<1x32xf32, #tpu.memory_space<vmem>>, vector<1x32xf32>
    %20 = vector.broadcast %19 : vector<1x32xf32> to vector<16x32xf32>
    %21 = arith.mulf %18, %20 : vector<16x32xf32>
    %c0_7 = arith.constant 0 : index
    %c0_8 = arith.constant 0 : index
    %22 = vector.load %arg3[%c0_7, %c0_8] : memref<1x32xf32, #tpu.memory_space<vmem>>, vector<1x32xf32>
    %23 = vector.broadcast %22 : vector<1x32xf32> to vector<16x32xf32>
    %24 = arith.addf %21, %23 : vector<16x32xf32>
    %25 = arith.truncf %24 : vector<16x32xf32> to vector<16x32xbf16>
    %c0_9 = arith.constant 0 : index
    %c0_10 = arith.constant 0 : index
    %26 = vector.load %arg4[%c0_9, %c0_10] : memref<32x96xbf16, #tpu.memory_space<vmem>>, vector<32x96xbf16>
    %cst_11 = arith.constant dense<0.000000e+00> : vector<16x96xf32>
    %27 = tpu.matmul %25, %26, %cst_11 {dimension_numbers = #tpu.dot_dimension_numbers<[1], [0], [0], [1], [0, 0, 1, 1], [], []>} : vector<16x32xbf16>, vector<32x96xbf16>, vector<16x96xf32> -> vector<16x96xf32>
    %c0_12 = arith.constant 0 : index
    %c0_13 = arith.constant 0 : index
    %28 = vector.load %arg5[%c0_12, %c0_13] : memref<1x96xf32, #tpu.memory_space<vmem>>, vector<1x96xf32>
    %29 = vector.broadcast %28 : vector<1x96xf32> to vector<16x96xf32>
    %30 = arith.addf %27, %29 : vector<16x96xf32>
    %c0_14 = arith.constant 0 : index
    %c0_15 = arith.constant 0 : index
    %31 = vector.load %arg6[%c0_14, %c0_15] : memref<16x96xf32, #tpu.memory_space<vmem>>, vector<16x96xf32>
    tpu.vector_store %arg6[%c0_14, %c0_15], %30 {strides = array<i32>} : memref<16x96xf32, #tpu.memory_space<vmem>>, vector<16x96xf32>,
    return
  }
  func.func @transform_0(%arg0: i32) -> (i32, i32) {
    %c0_i32 = arith.constant 0 : i32
    %c0_i32_0 = arith.constant 0 : i32
    return %arg0, %c0_i32 : i32, i32
  }
  func.func @transform_1(%arg0: i32) -> (i32, i32) {
    %c0_i32 = arith.constant 0 : i32
    %c0_i32_0 = arith.constant 0 : i32
    %c0_i32_1 = arith.constant 0 : i32
    return %c0_i32, %c0_i32_0 : i32, i32
  }
  func.func @transform_2(%arg0: i32) -> (i32, i32) {
    %c0_i32 = arith.constant 0 : i32
    %c0_i32_0 = arith.constant 0 : i32
    %c0_i32_1 = arith.constant 0 : i32
    return %c0_i32, %c0_i32_0 : i32, i32
  }
  func.func @transform_3(%arg0: i32) -> (i32, i32) {
    %c0_i32 = arith.constant 0 : i32
    %c0_i32_0 = arith.constant 0 : i32
    %c0_i32_1 = arith.constant 0 : i32
    return %c0_i32, %c0_i32_0 : i32, i32
  }
  func.func @transform_4(%arg0: i32) -> (i32, i32) {
    %c0_i32 = arith.constant 0 : i32
    %c0_i32_0 = arith.constant 0 : i32
    %c0_i32_1 = arith.constant 0 : i32
    return %c0_i32, %c0_i32_0 : i32, i32
  }
  func.func @transform_5(%arg0: i32) -> (i32, i32) {
    %c0_i32 = arith.constant 0 : i32
    %c0_i32_0 = arith.constant 0 : i32
    return %arg0, %c0_i32 : i32, i32
  }
}

</mosaic_0001>

<bundles_post_ra>
// kernel: tpu_custom_call.1
= control target key start
LH: loop header
LB: loop body
LE: loop exit
PB: predicated region body
PF: predicated region fallthrough
CT: control target
= control target key end

     0   :  { %10 = vsyncpa [#allocation3], 0  ;;  %s386_s0 = inlined_call_operand.hbm [shape: f32[16,32], index: 0, kind: input, shape index: {}]   ;;  %s387_s1 = inlined_call_operand.vmem [shape: f32[1,32], index: 1, kind: input, shape index: {}]   ;;  %s388_s2 = inlined_call_operand.vmem [shape: f32[1,32], index: 2, kind: input, shape index: {}]   ;;  %s389_s3 = inlined_call_operand.hbm [shape: bf16[32,96], index: 3, kind: input, shape index: {}]   ;;  %s390_s4 = inlined_call_operand.vmem [shape: f32[1,96], index: 4, kind: input, shape index: {}]   ;;  %s391_s5 = inlined_call_operand.hbm [shape: f32[16,96], index: 5, kind: output, shape index: {}]  }
   0x1   :  { %11 = vsyncpa [#allocation6], 0 }
   0x2   :  { %12 = vsyncpa [#allocation4], 0  ;;  %s291_s18 = smov [#allocation2]   ;;  %s219_s22 = scalar_lea.hbm %s386_s0, 256 }
   0x3   :  { %s18_s19 = sshll.u32 %s291_s18, 4  ;;  %p220_p0 = scmp.ne.s32.totalorder %s386_s0, %s219_s22  ;;  %s19_s19 = int_to_ptr.vmem [resolvable:$true] %s18_s19 }
   0x4   :  { %p223_p1 = scmp.lt.u32.totalorder %s219_s22, %s386_s0 }
   0x6   :  { %p225_p2 = pnand %p223_p1, %p220_p0 }
   0x8   :  { %228 = shalt.err (!%p225_p2)
}
   0x9   :  { %s229_s27 = scalar_lea.vmem %s19_s19, 256  ;;  %p234_p4 = scmp.lt.s32.totalorder %s19_s19, %s19_s19 }
   0xa   :  { %p230_p3 = scmp.ne.s32.totalorder %s19_s19, %s229_s27  ;;  %p235_p5 = scmp.lt.s32.totalorder %s229_s27, %s229_s27 }
   0xc   :  { %p236_p6 = por %p235_p5, %p234_p4 }
   0xe   :  { %p237_p7 = pnand %p236_p6, %p230_p3 }
  0x10   :  { %240 = shalt.err (!%p237_p7)
}
  0x11   :  { %s292_s28 = smov 128   ;;  %s293_s29 = smov 8  }
  0x12   :  { %24 = dma.hbm_to_vmem [thread:$0]  %s386_s0, 256, %s19_s19, [#allocation3], %s292_s28, %s292_s28, %s293_s29  }
  0x13   :  { %s294_s7 = smov [#allocation5]   ;;  %s241_s11 = scalar_lea.hbm %s389_s3, 256 }
  0x14   :  { %s34_s8 = sshll.u32 %s294_s7, 4  ;;  %p242_p8 = scmp.ne.s32.totalorder %s389_s3, %s241_s11  ;;  %s35_s8 = int_to_ptr.vmem [resolvable:$true] %s34_s8 }
  0x15   :  { %p245_p9 = scmp.lt.u32.totalorder %s241_s11, %s389_s3 }
  0x17   :  { %p247_p10 = pnand %p245_p9, %p242_p8 }
  0x19   :  { %250 = shalt.err (!%p247_p10)
}
  0x1a   :  { %s251_s16 = scalar_lea.vmem %s35_s8, 256  ;;  %p256_p12 = scmp.lt.s32.totalorder %s35_s8, %s35_s8 }
  0x1b   :  { %p252_p11 = scmp.ne.s32.totalorder %s35_s8, %s251_s16  ;;  %p257_p13 = scmp.lt.s32.totalorder %s251_s16, %s251_s16 }
  0x1d   :  { %p258_p0 = por %p257_p13, %p256_p12 }
  0x1f   :  { %p259_p1 = pnand %p258_p0, %p252_p11 }
  0x21   :  { %262 = shalt.err (!%p259_p1)
}
  0x22   :  { %s295_s0 = smov 64   ;;  %s296_s17 = smov 4  }
  0x23   :  { %40 = dma.hbm_to_vmem [thread:$0]  %s389_s3, 256, %s35_s8, [#allocation6], %s295_s0, %s295_s0, %s296_s17  }
  0x24   :  { %285 = dma.done.wait [#allocation3], 256  }
  0x25   :  { %286 = vsyncadd [#allocation3], 4294967040 }
  0x26   :  { %287 = dma.done.wait [#allocation6], 256  }
  0x27   :  { %288 = vsyncadd [#allocation6], 4294967040  ;;  %vm52_vm0 = vcmask 261120   ;;  %v50_v0 = vld [vmem:[#allocation2] sm:$0xff]  ;;  %v51_v1 = vld [vmem:[#allocation2 + $0x8] sm:$0xff]  ;;  %v297_v15 = vmov 0.0  }
  0x28   :  { %v53_v2 = vsel %vm52_vm0, %v50_v0, 0.0  ;;  %v56_v3 = vsel %vm52_vm0, %v51_v1, 0.0  ;;  %v213_v14 = vld [vmem:[#allocation5] sm:$0xff]   ;;  %196 = vmatprep.subr.bf16.mxu0 %v297_v15  ;;  %v214_v16 = vld [vmem:[#allocation5 + $0x8] sm:$0xff]   ;;  %vm298_vm1 = vmmov 0   ;;  %vm166_vm2 = vcmask 785408  }
  0x29   :  { %54 = vadd.xlane.f32.xlu0 %v53_v2  ;;  %197 = vmatpush3.bf16.msra.mxu0 %v213_v14  ;;  %v187_v25 = vld [vmem:[%s387_s1] ss:$0 sm:$0xff]  ;;  %s299_s1 = smov [#allocation7]  }
  0x2a   :  { %200 = vmatprep.mubr.msk.bf16.mxu0 %vm298_vm1, %v297_v15  ;;  %198 = vmatprep.subr.bf16.mxu0 %v297_v15  ;;  %v188_v29 = vld [vmem:[%s388_s2] ss:$0 sm:$0xff]  ;;  %s174_s25 = sshll.u32 %s299_s1, 4  ;;  %s175_s25 = int_to_ptr.vmem [resolvable:$true] %s174_s25 }
  0x2b   :  { %v189_v34 = vld [vmem:[%s390_s4] ss:$0 sm:$0xff]  ;;  %s263_s2 = scalar_lea.vmem %s175_s25, 256  ;;  %p268_p3 = scmp.lt.s32.totalorder %s175_s25, %s175_s25 }
  0x2c   :  { %p264_p2 = scmp.ne.s32.totalorder %s175_s25, %s263_s2  ;;  %p269_p4 = scmp.lt.s32.totalorder %s263_s2, %s263_s2 }
  0x2d   :  { %57 = vadd.xlane.f32.xlu0 %v56_v3  ;;  %199 = vmatpush3.bf16.msra.mxu0 %v214_v16 }
  0x2e   :  { %p270_p5 = por %p269_p4, %p268_p3 }
  0x30   :  { %p271_p6 = pnand %p270_p5, %p264_p2 }
  0xb6   :  { %v55_v4 = vpop.xlane.xlu0 %54 }
  0xb7   :  { %v60_v5 = vmul.f32 0.03125, %v55_v4 }
  0xb9   :  { %v62_v6 = vsub.f32 %v50_v0, %v60_v5 }
  0xba   :  { %v58_v7 = vpop.xlane.xlu0 %57 }
  0xbb   :  { %v61_v8 = vmul.f32 0.03125, %v58_v7  ;;  %v64_v9 = vmul.f32 %v62_v6, %v62_v6 }
  0xbd   :  { %v63_v10 = vsub.f32 %v51_v1, %v61_v8  ;;  %v66_v11 = vsel %vm52_vm0, %v64_v9, 0.0 }
  0xbe   :  { %67 = vadd.xlane.f32.xlu1 %v66_v11 }
  0xbf   :  { %v65_v12 = vmul.f32 %v63_v10, %v63_v10 }
  0xc1   :  { %v69_v13 = vsel %vm52_vm0, %v65_v12, 0.0 }
  0xc2   :  { %70 = vadd.xlane.f32.xlu1 %v69_v13 }
 0x14b   :  { %v68_v17 = vpop.xlane.xlu1 %67 }
 0x14c   :  { %v72_v18 = vmul.f32 0.03125, %v68_v17 }
 0x14e   :  { %v74_v19 = vadd.f32 1e-05, %v72_v18 }
 0x14f   :  { %v71_v20 = vpop.xlane.xlu1 %70 }
 0x150   :  { %215 = vrsqrt.f32 %v74_v19  ;;  %v73_v21 = vmul.f32 0.03125, %v71_v20 }
 0x152   :  { %v75_v22 = vadd.f32 1e-05, %v73_v21 }
 0x154   :  { %217 = vrsqrt.f32 %v75_v22 }
 0x15a   :  { %v216_v23 = vpop.eup %215 }
 0x15b   :  { %v78_v24 = vmul.f32 %v216_v23, %v62_v6 }
 0x15d   :  { %v87_v28 = vmul.f32 %v187_v25, %v78_v24 }
 0x15e   :  { %v218_v26 = vpop.eup %217 }
 0x15f   :  { %v79_v27 = vmul.f32 %v218_v26, %v63_v10  ;;  %v96_v31 = vadd.f32 %v188_v29, %v87_v28 }
 0x161   :  { %v88_v30 = vmul.f32 %v187_v25, %v79_v27 }
 0x163   :  { %v97_v32 = vadd.f32 %v188_v29, %v88_v30 }
 0x165   :  { %v98_v33 = vpack.c.bf16 %v97_v32, %v96_v31 }
 0x167   :  { %201 = vmatmul.mubr.msk.bf16.vlgmr.msra.gmra.mrb[0].mxu0 %vm52_vm0, %v98_v33 }
 0x23a   :  { %v159_v35 = vpop.f32.mrb[0].mxu0 }
 0x23b   :  { %v160_v36 = vadd.f32 %v189_v34, %v159_v35  ;;  %v202_v37 = vpop.f32.mrb[1].mxu0 }
 0x23c   :  { %v162_v38 = vpop.f32.mrb[2].mxu0 }
 0x23d   :  { %v163_v39 = vadd.f32 %v189_v34, %v162_v38  ;;  %v203_v40 = vpop.f32.mrb[3].mxu0  ;;  %167 = vst.msk [vmem:[#allocation7] sm:$0xff] %vm166_vm2, %v160_v36 }
 0x23f   :  { %168 = vst.msk [vmem:[#allocation7 + $0x8] sm:$0xff] %vm166_vm2, %v163_v39 }
 0x240   :  { %274 = shalt.err (!%p271_p6)
}
 0x241   :  { %s275_s27 = scalar_lea.hbm %s391_s5, 256 }
 0x242   :  { %p276_p7 = scmp.ne.s32.totalorder %s391_s5, %s275_s27  ;;  %p279_p8 = scmp.lt.u32.totalorder %s275_s27, %s391_s5 }
 0x244   :  { %p281_p9 = pnand %p279_p8, %p276_p7 }
 0x246   :  { %284 = shalt.err (!%p281_p9)
}
 0x247   :  { %180 = dma.vmem_to_hbm [thread:$0]  %s175_s25, 256, %s391_s5, [#allocation4], %s292_s28, %s292_s28, %s293_s29  }
 0x248   :  { %289 = dma.done.wait [#allocation4], 256  }
 0x249   :  { %290 = vsyncadd [#allocation4], 4294967040 }
 0x24a   :  { %184 = vsyncpa [#allocation3], 1 }
 0x24b   :  { %185 = vsyncpa [#allocation6], 1 }
 0x24c   :  { %186 = vsyncpa [#allocation4], 1 }

</bundles_post_ra>
